<compile_context>
chip_gen: v5e
topology: v5e:2x2
jax: 0.10.0
libtpu: 0.0.40
codegen_flags: <defaults>
</compile_context>

<pallas_src>
import numpy as np
import jax
import jax.numpy as jnp
from jax.experimental import pallas as pl
from jax.experimental.pallas import tpu as pltpu


def _round_up(x, m):
    return (x + m - 1) // m * m


# ---------------------------------------------------------------------------
# Pallas kernel: the whole MLP hot path (2 MXU matmuls + VPU/XLU fc3) in VMEM.
# ---------------------------------------------------------------------------
def critic_kernel(s_ref, a_ref, w1s_ref, w1a_ref, b1_ref,
                  w2_ref, b2_ref, w3_ref, b3_ref, o_ref):
    # fc1 (split matmul == cat([state, action]) @ W1) + bias + ReLU.
    # Operands arrive bf16; accumulation and elementwise stay f32.
    h1 = (jnp.dot(s_ref[...], w1s_ref[...], preferred_element_type=jnp.float32)
          + jnp.dot(a_ref[...], w1a_ref[...], preferred_element_type=jnp.float32)
          + b1_ref[...])
    h1 = jnp.maximum(h1, 0.0)

    # fc2 + ReLU (MXU).
    h2 = jnp.dot(h1.astype(jnp.bfloat16), w2_ref[...],
                 preferred_element_type=jnp.float32) + b2_ref[...]
    h2 = jnp.maximum(h2, 0.0)

    # fc3: single output column -> VPU multiply + cross-lane (XLU) reduce.
    # Keeps the output block at (tb, 1); no lane padding / no third MXU dot.
    q = jnp.sum(h2 * w3_ref[...], axis=-1, keepdims=True) + b3_ref[...]
    o_ref[...] = q.astype(o_ref.dtype)


def critic_forward(state, action, params, *, block_b=1024):
    """state: (B, S), action: (B, A) -> Q: (B, 1)."""
    w1s, w1a, b1, w2, b2, w3r, b3 = params
    B, S = state.shape
    A = action.shape[1]
    H = w2.shape[0]

    # Batch tile: multiple of 8, capped at block_b, and chosen so the grid
    # has >= 2 steps whenever B allows (dual-TC sharding on v7x).
    b8 = _round_up(B, 8)
    tb = min(block_b, max(8, _round_up(pl.cdiv(b8, 2), 8)))
    b_pad = _round_up(B, tb)

    # bf16 inputs at the pallas_call boundary: halves input DMA bytes and
    # removes in-kernel f32->bf16 packs (operands are bf16 at the MXU anyway).
    state = state.astype(jnp.bfloat16)
    action = action.astype(jnp.bfloat16)
    if b_pad != B:
        state = jnp.pad(state, ((0, b_pad - B), (0, 0)))
        action = jnp.pad(action, ((0, b_pad - B), (0, 0)))

    const = lambda i: (0, 0)                    # weights resident across steps

    out = pl.pallas_call(
        critic_kernel,
        out_shape=jax.ShapeDtypeStruct((b_pad, 1), jnp.float32),
        grid=(b_pad // tb,),
        in_specs=[
            pl.BlockSpec((tb, S), lambda i: (i, 0)),     # state tile (bf16)
            pl.BlockSpec((tb, A), lambda i: (i, 0)),     # action tile (bf16)
            pl.BlockSpec((S, H), const),                 # W1[:S]   (bf16)
            pl.BlockSpec((A, H), const),                 # W1[S:]   (bf16)
            pl.BlockSpec((1, H), const),                 # b1       (f32)
            pl.BlockSpec((H, H), const),                 # W2       (bf16)
            pl.BlockSpec((1, H), const),                 # b2       (f32)
            pl.BlockSpec((1, H), const),                 # W3 row   (f32)
            pl.BlockSpec((1, 1), const),                 # b3       (f32)
        ],
        out_specs=pl.BlockSpec((tb, 1), lambda i: (i, 0)),
        compiler_params=pltpu.CompilerParams(
            dimension_semantics=("parallel",)),
    )(state, action, w1s, w1a, b1, w2, b2, w3r, b3)

    return out[:B]


# ---------------------------------------------------------------------------
# Deterministic parameter init (mirrors Critic.__init__ / reset_parameters):
#   fc1, fc2 weights ~ U(-1/sqrt(fan), 1/sqrt(fan));  fc3 weights ~ U(-3e-3, 3e-3)
# Note: hidden_init uses weight.size(0) == out_features, reproduced here.
# ---------------------------------------------------------------------------
def init_critic_params(key, state_size, action_size, hidden_size=32):
    in_dim = state_size + action_size
    ks = jax.random.split(key, 6)

    def uniform(k, shape, lim):
        return jax.random.uniform(k, shape, jnp.float32, -lim, lim)

    lim_h = 1.0 / np.sqrt(hidden_size)   # fan = weight.size(0) = out_features
    w1 = uniform(ks[0], (in_dim, hidden_size), lim_h)
    b1 = uniform(ks[1], (1, hidden_size), 1.0 / np.sqrt(in_dim))
    w2 = uniform(ks[2], (hidden_size, hidden_size), lim_h)
    b2 = uniform(ks[3], (1, hidden_size), 1.0 / np.sqrt(hidden_size))
    w3 = uniform(ks[4], (hidden_size, 1), 3e-3)
    b3 = uniform(ks[5], (1, 1), 1.0 / np.sqrt(hidden_size))
    return (w1, b1, w2, b2, w3, b3)


def prepare_params(raw_params, state_size):
    """Split W1, cast matmul weights to bf16, keep fc3 row + biases f32."""
    w1, b1, w2, b2, w3, b3 = raw_params
    w1s = w1[:state_size].astype(jnp.bfloat16)
    w1a = w1[state_size:].astype(jnp.bfloat16)
    w3r = w3.reshape(1, -1).astype(jnp.float32)           # (1, H) for VPU fc3
    return (w1s, w1a, b1, w2.astype(jnp.bfloat16), b2, w3r, b3)


# ---------------------------------------------------------------------------
# Pure-JAX references for correctness checks.
# ---------------------------------------------------------------------------
def critic_ref_f32(state, action, raw_params):
    w1, b1, w2, b2, w3, b3 = raw_params
    x = jnp.concatenate([state, action], axis=-1)
    h1 = jnp.maximum(x @ w1 + b1, 0.0)
    h2 = jnp.maximum(h1 @ w2 + b2, 0.0)
    return h2 @ w3 + b3


def critic_ref_bf16(state, action, params):
    # Same bf16-operand / f32-accumulate math as the kernel.
    w1s, w1a, b1, w2, b2, w3r, b3 = params
    s = state.astype(jnp.bfloat16)
    a = action.astype(jnp.bfloat16)
    h1 = jnp.maximum(jnp.dot(s, w1s, preferred_element_type=jnp.float32)
                     + jnp.dot(a, w1a, preferred_element_type=jnp.float32)
                     + b1, 0.0)
    h2 = jnp.maximum(jnp.dot(h1.astype(jnp.bfloat16), w2,
                             preferred_element_type=jnp.float32) + b2, 0.0)
    return jnp.sum(h2 * w3r, axis=-1, keepdims=True) + b3


# TODO(synk): for the full CQL-SAC training step, fuse the twin Q1/Q2 critics
# (and the CQL repeated-action expansion) into one pallas_call by stacking
# weights along the hidden/output axis; this single-critic kernel keeps the
# module's forward semantics.

if __name__ == "__main__":
    batch, state_size, action_size, hidden_size = 8, 8, 4, 32

    key = jax.random.PRNGKey(0)
    k_state, k_action, k_params = jax.random.split(key, 3)

    state = jax.random.normal(k_state, (batch, state_size), jnp.float32)
    action = jax.random.normal(k_action, (batch, action_size), jnp.float32)
    raw_params = init_critic_params(k_params, state_size, action_size, hidden_size)
    params = prepare_params(raw_params, state_size)

    q = critic_forward(state, action, params)
    q = jax.block_until_ready(q)
    assert q.shape == (batch, 1)

    # Tight check against a reference doing the same bf16-MXU / f32-VPU math.
    q_ref_bf16 = critic_ref_bf16(state, action, params)
    np.testing.assert_allclose(np.asarray(q), np.asarray(q_ref_bf16),
                               rtol=1e-3, atol=1e-3)

    # Loose check against the full-f32 PyTorch-equivalent reference.
    q_ref_f32 = critic_ref_f32(state, action, raw_params)
    np.testing.assert_allclose(np.asarray(q), np.asarray(q_ref_f32),
                               rtol=3e-2, atol=3e-2)

    print("KERNEL_OK")
</pallas_src>

<mosaic_0001>
module attributes {stable_mosaic.version = 11 : i64} {
  func.func @critic_kernel(%arg0: i32, %arg1: memref<8x8xbf16, #tpu.memory_space<vmem>>, %arg2: memref<8x4xbf16, #tpu.memory_space<vmem>>, %arg3: memref<8x32xbf16, #tpu.memory_space<vmem>>, %arg4: memref<4x32xbf16, #tpu.memory_space<vmem>>, %arg5: memref<1x32xf32, #tpu.memory_space<vmem>>, %arg6: memref<32x32xbf16, #tpu.memory_space<vmem>>, %arg7: memref<1x32xf32, #tpu.memory_space<vmem>>, %arg8: memref<1x32xf32, #tpu.memory_space<vmem>>, %arg9: memref<1x1xf32, #tpu.memory_space<vmem>>, %arg10: memref<8x1xf32, #tpu.memory_space<vmem>>) attributes {dimension_semantics = [#tpu.dimension_semantics<parallel>], iteration_bounds = array<i64: 1>, scalar_prefetch = 0 : i64, scratch_operands = 0 : i64, tpu.core_type = #tpu.core_type<tc>, window_params = [{transform_indices = @transform_0, window_bounds = array<i64: 8, 8>}, {transform_indices = @transform_1, window_bounds = array<i64: 8, 4>}, {pipeline_mode = #tpu.pipeline_mode<synchronous>, transform_indices = @transform_2, window_bounds = array<i64: 8, 32>}, {pipeline_mode = #tpu.pipeline_mode<synchronous>, transform_indices = @transform_3, window_bounds = array<i64: 4, 32>}, {pipeline_mode = #tpu.pipeline_mode<synchronous>, transform_indices = @transform_4, window_bounds = array<i64: 1, 32>}, {pipeline_mode = #tpu.pipeline_mode<synchronous>, transform_indices = @transform_5, window_bounds = array<i64: 32, 32>}, {pipeline_mode = #tpu.pipeline_mode<synchronous>, transform_indices = @transform_6, window_bounds = array<i64: 1, 32>}, {pipeline_mode = #tpu.pipeline_mode<synchronous>, transform_indices = @transform_7, window_bounds = array<i64: 1, 32>}, {pipeline_mode = #tpu.pipeline_mode<synchronous>, transform_indices = @transform_8, window_bounds = array<i64: 1, 1>}, {transform_indices = @transform_9, window_bounds = array<i64: 8, 1>}]} {
    %c0 = arith.constant 0 : index
    %c0_0 = arith.constant 0 : index
    %0 = vector.load %arg1[%c0, %c0_0] : memref<8x8xbf16, #tpu.memory_space<vmem>>, vector<8x8xbf16>
    %c0_1 = arith.constant 0 : index
    %c0_2 = arith.constant 0 : index
    %1 = vector.load %arg3[%c0_1, %c0_2] : memref<8x32xbf16, #tpu.memory_space<vmem>>, vector<8x32xbf16>
    %cst = arith.constant dense<0.000000e+00> : vector<8x32xf32>
    %2 = tpu.matmul %0, %1, %cst {dimension_numbers = #tpu.dot_dimension_numbers<[1], [0], [0], [1], [0, 0, 1, 1], [], []>} : vector<8x8xbf16>, vector<8x32xbf16>, vector<8x32xf32> -> vector<8x32xf32>
    %c0_3 = arith.constant 0 : index
    %c0_4 = arith.constant 0 : index
    %3 = vector.load %arg2[%c0_3, %c0_4] : memref<8x4xbf16, #tpu.memory_space<vmem>>, vector<8x4xbf16>
    %c0_5 = arith.constant 0 : index
    %c0_6 = arith.constant 0 : index
    %4 = vector.load %arg4[%c0_5, %c0_6] : memref<4x32xbf16, #tpu.memory_space<vmem>>, vector<4x32xbf16>
    %cst_7 = arith.constant dense<0.000000e+00> : vector<8x32xf32>
    %5 = tpu.matmul %3, %4, %cst_7 {dimension_numbers = #tpu.dot_dimension_numbers<[1], [0], [0], [1], [0, 0, 1, 1], [], []>} : vector<8x4xbf16>, vector<4x32xbf16>, vector<8x32xf32> -> vector<8x32xf32>
    %6 = arith.addf %2, %5 : vector<8x32xf32>
    %c0_8 = arith.constant 0 : index
    %c0_9 = arith.constant 0 : index
    %7 = vector.load %arg5[%c0_8, %c0_9] : memref<1x32xf32, #tpu.memory_space<vmem>>, vector<1x32xf32>
    %8 = vector.broadcast %7 : vector<1x32xf32> to vector<8x32xf32>
    %9 = arith.addf %6, %8 : vector<8x32xf32>
    %cst_10 = arith.constant 0.000000e+00 : f32
    %10 = vector.broadcast %cst_10 : f32 to vector<8x32xf32>
    %11 = arith.maximumf %9, %10 : vector<8x32xf32>
    %12 = arith.truncf %11 : vector<8x32xf32> to vector<8x32xbf16>
    %c0_11 = arith.constant 0 : index
    %c0_12 = arith.constant 0 : index
    %13 = vector.load %arg6[%c0_11, %c0_12] : memref<32x32xbf16, #tpu.memory_space<vmem>>, vector<32x32xbf16>
    %cst_13 = arith.constant dense<0.000000e+00> : vector<8x32xf32>
    %14 = tpu.matmul %12, %13, %cst_13 {dimension_numbers = #tpu.dot_dimension_numbers<[1], [0], [0], [1], [0, 0, 1, 1], [], []>} : vector<8x32xbf16>, vector<32x32xbf16>, vector<8x32xf32> -> vector<8x32xf32>
    %c0_14 = arith.constant 0 : index
    %c0_15 = arith.constant 0 : index
    %15 = vector.load %arg7[%c0_14, %c0_15] : memref<1x32xf32, #tpu.memory_space<vmem>>, vector<1x32xf32>
    %16 = vector.broadcast %15 : vector<1x32xf32> to vector<8x32xf32>
    %17 = arith.addf %14, %16 : vector<8x32xf32>
    %cst_16 = arith.constant 0.000000e+00 : f32
    %18 = vector.broadcast %cst_16 : f32 to vector<8x32xf32>
    %19 = arith.maximumf %17, %18 : vector<8x32xf32>
    %c0_17 = arith.constant 0 : index
    %c0_18 = arith.constant 0 : index
    %20 = vector.load %arg8[%c0_17, %c0_18] : memref<1x32xf32, #tpu.memory_space<vmem>>, vector<1x32xf32>
    %21 = vector.broadcast %20 : vector<1x32xf32> to vector<8x32xf32>
    %22 = arith.mulf %19, %21 : vector<8x32xf32>
    %cst_19 = arith.constant dense<0.000000e+00> : vector<8xf32>
    %23 = vector.multi_reduction <add>, %22, %cst_19 [1] : vector<8x32xf32> to vector<8xf32>
    %24 = vector.shape_cast %23 : vector<8xf32> to vector<8x1xf32>
    %c0_20 = arith.constant 0 : index
    %c0_21 = arith.constant 0 : index
    %25 = vector.load %arg9[%c0_20, %c0_21] : memref<1x1xf32, #tpu.memory_space<vmem>>, vector<1x1xf32>
    %26 = vector.broadcast %25 : vector<1x1xf32> to vector<8x1xf32>
    %27 = arith.addf %24, %26 : vector<8x1xf32>
    %c0_22 = arith.constant 0 : index
    %c0_23 = arith.constant 0 : index
    %28 = vector.load %arg10[%c0_22, %c0_23] : memref<8x1xf32, #tpu.memory_space<vmem>>, vector<8x1xf32>
    tpu.vector_store %arg10[%c0_22, %c0_23], %27 {strides = array<i32>} : memref<8x1xf32, #tpu.memory_space<vmem>>, vector<8x1xf32>,
    return
  }
  func.func @transform_0(%arg0: i32) -> (i32, i32) {
    %c0_i32 = arith.constant 0 : i32
    %c0_i32_0 = arith.constant 0 : i32
    return %arg0, %c0_i32 : i32, i32
  }
  func.func @transform_1(%arg0: i32) -> (i32, i32) {
    %c0_i32 = arith.constant 0 : i32
    %c0_i32_0 = arith.constant 0 : i32
    return %arg0, %c0_i32 : i32, i32
  }
  func.func @transform_2(%arg0: i32) -> (i32, i32) {
    %c0_i32 = arith.constant 0 : i32
    %c0_i32_0 = arith.constant 0 : i32
    %c0_i32_1 = arith.constant 0 : i32
    return %c0_i32, %c0_i32_0 : i32, i32
  }
  func.func @transform_3(%arg0: i32) -> (i32, i32) {
    %c0_i32 = arith.constant 0 : i32
    %c0_i32_0 = arith.constant 0 : i32
    %c0_i32_1 = arith.constant 0 : i32
    return %c0_i32, %c0_i32_0 : i32, i32
  }
  func.func @transform_4(%arg0: i32) -> (i32, i32) {
    %c0_i32 = arith.constant 0 : i32
    %c0_i32_0 = arith.constant 0 : i32
    %c0_i32_1 = arith.constant 0 : i32
    return %c0_i32, %c0_i32_0 : i32, i32
  }
  func.func @transform_5(%arg0: i32) -> (i32, i32) {
    %c0_i32 = arith.constant 0 : i32
    %c0_i32_0 = arith.constant 0 : i32
    %c0_i32_1 = arith.constant 0 : i32
    return %c0_i32, %c0_i32_0 : i32, i32
  }
  func.func @transform_6(%arg0: i32) -> (i32, i32) {
    %c0_i32 = arith.constant 0 : i32
    %c0_i32_0 = arith.constant 0 : i32
    %c0_i32_1 = arith.constant 0 : i32
    return %c0_i32, %c0_i32_0 : i32, i32
  }
  func.func @transform_7(%arg0: i32) -> (i32, i32) {
    %c0_i32 = arith.constant 0 : i32
    %c0_i32_0 = arith.constant 0 : i32
    %c0_i32_1 = arith.constant 0 : i32
    return %c0_i32, %c0_i32_0 : i32, i32
  }
  func.func @transform_8(%arg0: i32) -> (i32, i32) {
    %c0_i32 = arith.constant 0 : i32
    %c0_i32_0 = arith.constant 0 : i32
    %c0_i32_1 = arith.constant 0 : i32
    return %c0_i32, %c0_i32_0 : i32, i32
  }
  func.func @transform_9(%arg0: i32) -> (i32, i32) {
    %c0_i32 = arith.constant 0 : i32
    %c0_i32_0 = arith.constant 0 : i32
    return %arg0, %c0_i32 : i32, i32
  }
}

</mosaic_0001>

<bundles_post_ra>
// kernel: tpu_custom_call.1
= control target key start
LH: loop header
LB: loop body
LE: loop exit
PB: predicated region body
PF: predicated region fallthrough
CT: control target
= control target key end

     0   :  { %s334_s0 = inlined_call_operand.vmem [shape: bf16[8,8], index: 0, kind: input, shape index: {}]   ;;  %s335_s1 = inlined_call_operand.vmem [shape: bf16[8,4], index: 1, kind: input, shape index: {}]   ;;  %s336_s2 = inlined_call_operand.hbm [shape: bf16[8,32], index: 2, kind: input, shape index: {}]   ;;  %s337_s3 = inlined_call_operand.vmem [shape: bf16[4,32], index: 3, kind: input, shape index: {}]   ;;  %s338_s4 = inlined_call_operand.vmem [shape: f32[1,32], index: 4, kind: input, shape index: {}]   ;;  %s339_s5 = inlined_call_operand.hbm [shape: bf16[32,32], index: 5, kind: input, shape index: {}]   ;;  %s340_s6 = inlined_call_operand.vmem [shape: f32[1,32], index: 6, kind: input, shape index: {}]   ;;  %s341_s7 = inlined_call_operand.vmem [shape: f32[1,32], index: 7, kind: input, shape index: {}]   ;;  %s342_s8 = inlined_call_operand.<no memory space> [shape: f32[1,1], index: 8, kind: input, shape index: {}]   ;;  %s343_s9 = inlined_call_operand.vmem [shape: f32[8,1], index: 9, kind: output, shape index: {}]  }
   0x1   :  { %v14_v0 = vstv %s342_s8 }
   0x2   :  { %15 = vst [vmem:[#allocation2] sm:$0x1] %v14_v0 }
   0x3   :  { %16 = vsyncpa [#allocation4], 0  ;;  %s27_s13 = sshll.u32 %s336_s2, 4  ;;  %s28_s13 = int_to_ptr.hbm [resolvable:$true] %s27_s13 }
   0x4   :  { %17 = vsyncpa [#allocation6], 0  ;;  %s250_s14 = smov [#allocation3]   ;;  %s41_s18 = sshll.u32 %s339_s5, 4  ;;  %s42_s18 = int_to_ptr.hbm [resolvable:$true] %s41_s18 }
   0x5   :  { %s29_s15 = sshll.u32 %s250_s14, 4  ;;  %s251_s19 = smov [#allocation5]   ;;  %s30_s15 = int_to_ptr.vmem [resolvable:$true] %s29_s15 }
   0x6   :  { %32 = dma.hbm_to_vmem [thread:$0]  %s28_s13, 64, %s30_s15, [#allocation4]  }
   0x7   :  { %s43_s20 = sshll.u32 %s251_s19, 4  ;;  %s252_s8 = smov 64   ;;  %s44_s20 = int_to_ptr.vmem [resolvable:$true] %s43_s20 }
   0x8   :  { %s253_s21 = smov 4  }
   0x9   :  { %49 = dma.hbm_to_vmem [thread:$0]  %s42_s18, 256, %s44_s20, [#allocation6], %s252_s8, %s252_s8, %s253_s21  }
   0xa   :  { %246 = dma.done.wait [#allocation4], 64  }
   0xb   :  { %247 = vsyncadd [#allocation4], 4294967232 }
   0xc   :  { %248 = dma.done.wait [#allocation6], 256  }
   0xd   :  { %249 = vsyncadd [#allocation6], 4294967040  ;;  %vm73_vm0 = vcmask 1041408   ;;  %vm94_vm1 = vcmask 1043456   ;;  %vm69_vm2 = vcmask 31744   ;;  %vm90_vm3 = vcmask 64512  }
   0xe   :  { %v68_v1 = vld [vmem:[%s337_s3] sm:$0x3]  ;;  %v189_v7 = vld [vmem:[#allocation5 + $0x8] sm:$0xff]  ;;  %v188_v8 = vld [vmem:[#allocation5] sm:$0xff]  ;;  %vm138_vm4 = vcmask 261120   ;;  %vm169_vm5 = vcmask 7168  }
   0xf   :  { %v66_v2 = vld [vmem:[#allocation3] sm:$0xf]  ;;  %v75_v4 = vsel %vm73_vm0, %v68_v1, 0  ;;  %148 = vmatpush.bf16.msra.mxu2 %v189_v7  ;;  %v194_v9 = vld [vmem:[%s338_s4] ss:$0 sm:$0xff] }
  0x10   :  { %v67_v3 = vld [vmem:[%s335_s1] sm:$0xf]  ;;  %v96_v5 = vsel %vm94_vm1, %v66_v2, 0  ;;  %84 = vmatpush.bf16.msra.mxu0 %v75_v4 }
  0x11   :  { %v65_v6 = vld [vmem:[%s334_s0] sm:$0xf]  ;;  %105 = vmatpush.bf16.msra.mxu1 %v96_v5 }
  0x12   :  { %v195_v18 = vld [vmem:[%s340_s6] ss:$0 sm:$0xff] }
  0x13   :  { %177 = vmatmul.msk.bf16.vlgmr.msra.gmra.mxu0 %vm69_vm2, %v67_v3  ;;  %149 = vmatpush.bf16.msra.mxu2 %v188_v8  ;;  %v196_v21 = vld [vmem:[%s341_s7] ss:$0 sm:$0xff] }
  0x14   :  { %178 = vmatmul.msk.bf16.vlgmr.msra.gmra.mxu1 %vm90_vm3, %v65_v6  ;;  %v197_v26 = vld [vmem:[#allocation2] ss:$0 sm:$0xff] }
  0x90   :  { %v86_v10 = vpop.f32.mrf.mxu0 }
  0x91   :  { %v107_v11 = vpop.f32.mrf.mxu1 }
  0x92   :  { %v108_v12 = vadd.f32 %v107_v11, %v86_v10 }
  0x94   :  { %v115_v13 = vadd.f32 %v194_v9, %v108_v12 }
  0x96   :  { %v116_v14 = vmax.f32 %v115_v13, 0.0 }
  0x98   :  { %v117_v15 = vpack.c.bf16 %v116_v14, %v116_v14  ;;  %v88_v16 = vpop.f32.mrf.mxu0 }
  0x99   :  { %v109_v17 = vpop.f32.mrf.mxu1 }
  0x9a   :  { %187 = vmatmul.msk.bf16.vlgmr.msra.gmra.mxu2 %vm138_vm4, %v117_v15 }
 0x11d   :  { %v151_v19 = vpop.f32.mrf.mxu2 }
 0x11e   :  { %v152_v20 = vadd.f32 %v195_v18, %v151_v19 }
 0x120   :  { %v155_v22 = vmax.f32 %v152_v20, 0.0 }
 0x122   :  { %v160_v23 = vmul.f32 %v196_v21, %v155_v22 }
 0x124   :  { %v161_v24 = vsel %vm138_vm4, %v160_v23, 0.0 }
 0x125   :  { %v153_v25 = vpop.f32.mrf.mxu2  ;;  %162 = vadd.xlane.f32.xlu0 %v161_v24 }
 0x198   :  { %v163_v27 = vpop.xlane.xlu0 %162 }
 0x199   :  { %v168_v28 = vadd.f32 %v197_v26, %v163_v27 }
 0x19b   :  { %170 = vst.msk [vmem:[%s343_s9] sm:$0xff] %vm169_vm5, %v168_v28 }
 0x19c   :  { %175 = vsyncpa [#allocation4], 1 }
 0x19d   :  { %176 = vsyncpa [#allocation6], 1 }

</bundles_post_ra>
